<compile_context>
chip_gen: v5e
topology: v5e:2x2
jax: 0.10.0
libtpu: 0.0.40
codegen_flags: <defaults>
</compile_context>

<pallas_src>
import jax
import jax.numpy as jnp
from jax.experimental import pallas as pl
from jax.experimental.pallas import tpu as pltpu

IN_FEATURES = 10
OUT_FEATURES = 3


def _linear_softmax_kernel(xT_ref, w_ref, b_ref, o_ref):
    # xT_ref: (IN_FEATURES, TB) f32 VMEM   -- batch on lanes (lane-dense)
    # w_ref : (OUT_FEATURES, IN_FEATURES) f32 SMEM (torch layout, scalar reads)
    # b_ref : (1, OUT_FEATURES) f32 SMEM
    # o_ref : (OUT_FEATURES, TB) f32 VMEM  -- lane-dense output slab
    x = xT_ref[...]                                   # (IN, TB)

    # Three unrolled 10-MAC dot products on the VPU (no MXU involvement).
    logits = []
    for c in range(OUT_FEATURES):
        acc = x[0:1, :] * w_ref[c, 0]                 # (1, TB)
        for k in range(1, IN_FEATURES):
            acc = acc + x[k:k + 1, :] * w_ref[c, k]
        logits.append(acc + b_ref[0, c])

    # Numerically stable softmax across the 3 classes (per batch column).
    m = jnp.maximum(jnp.maximum(logits[0], logits[1]), logits[2])
    e = [jnp.exp(l - m) for l in logits]
    inv = pl.reciprocal(e[0] + e[1] + e[2], approx=False)   # EUP slot
    for c in range(OUT_FEATURES):
        o_ref[c:c + 1, :] = e[c] * inv


def linear_softmax(x, w, b, *, tb=512):
    """x: (B, 10) f32, w: (3, 10) f32 (torch layout), b: (3,) f32 -> (B, 3) f32."""
    B = x.shape[0]

    # Lane-dense batch tile: multiple of 128, capped at what the batch needs.
    tb = max(128, (int(tb) // 128) * 128)
    tb = min(tb, ((B + 127) // 128) * 128)
    n_tiles = pl.cdiv(B, tb)
    Bp = n_tiles * tb

    # Transposed layout: batch on lanes. Pad batch up to a whole number of tiles.
    x_t = x.T                                          # (IN, B)
    if Bp != B:
        x_t = jnp.pad(x_t, ((0, 0), (0, Bp - B)))
    b2d = b.reshape(1, OUT_FEATURES)

    out_t = pl.pallas_call(
        _linear_softmax_kernel,
        out_shape=jax.ShapeDtypeStruct((OUT_FEATURES, Bp), jnp.float32),
        grid=(n_tiles,),
        in_specs=[
            # x tiles stream over the batch (lane) axis; pipelined by Pallas.
            pl.BlockSpec((IN_FEATURES, tb), lambda i: (0, i)),
            # Weights and bias stay resident in SMEM for the whole grid.
            pl.BlockSpec(memory_space=pltpu.MemorySpace.SMEM),
            pl.BlockSpec(memory_space=pltpu.MemorySpace.SMEM),
        ],
        out_specs=pl.BlockSpec((OUT_FEATURES, tb), lambda i: (0, i)),
        compiler_params=pltpu.CompilerParams(
            dimension_semantics=("parallel",),   # shards across v7x's 2 TCs
        ),
    )(x_t, w, b2d)

    return out_t.T[:B]                                 # back to (B, 3)


def init_params(key):
    # Deterministic init mimicking torch.nn.Linear default:
    # uniform(-1/sqrt(fan_in), 1/sqrt(fan_in)); weight kept in torch (out, in) layout.
    k_w, k_b = jax.random.split(key)
    bound = 1.0 / (IN_FEATURES ** 0.5)
    w = jax.random.uniform(
        k_w, (OUT_FEATURES, IN_FEATURES), jnp.float32, -bound, bound
    )
    b = jax.random.uniform(k_b, (OUT_FEATURES,), jnp.float32, -bound, bound)
    return w, b


if __name__ == "__main__":
    key = jax.random.PRNGKey(0)
    k_x, k_p = jax.random.split(key)

    B = 200  # not a multiple of the tile -> exercises the pad/slice path
    x = jax.random.normal(k_x, (B, IN_FEATURES), jnp.float32)
    w, b = init_params(k_p)

    out = jax.block_until_ready(linear_softmax(x, w, b, tb=128))  # grid=(2,)

    # sanity: matches XLA reference and rows sum to 1
    ref = jax.nn.softmax(x @ w.T + b, axis=1)
    assert out.shape == (B, OUT_FEATURES)
    assert jnp.allclose(out, ref, atol=1e-5, rtol=1e-5)
    assert jnp.allclose(jnp.sum(out, axis=1), jnp.ones((B,)), atol=1e-5)

    print("KERNEL_OK")
</pallas_src>

<mosaic_0001>
module attributes {stable_mosaic.version = 11 : i64} {
  func.func @_linear_softmax_kernel(%arg0: i32, %arg1: memref<10x128xf32, #tpu.memory_space<vmem>>, %arg2: memref<3x10xf32, #tpu.memory_space<smem>>, %arg3: memref<1x3xf32, #tpu.memory_space<smem>>, %arg4: memref<3x128xf32, #tpu.memory_space<vmem>>) attributes {dimension_semantics = [#tpu.dimension_semantics<parallel>], iteration_bounds = array<i64: 2>, scalar_prefetch = 0 : i64, scratch_operands = 0 : i64, tpu.core_type = #tpu.core_type<tc>, window_params = [{transform_indices = @transform_0, window_bounds = array<i64: 10, 128>}, {transform_indices = @transform_1, window_bounds = array<i64: 3, 10>}, {transform_indices = @transform_2, window_bounds = array<i64: 1, 3>}, {transform_indices = @transform_3, window_bounds = array<i64: 3, 128>}]} {
    %c0 = arith.constant 0 : index
    %c0_0 = arith.constant 0 : index
    %0 = vector.load %arg1[%c0, %c0_0] : memref<10x128xf32, #tpu.memory_space<vmem>>, vector<10x128xf32>
    %1 = vector.extract_strided_slice %0 {offsets = [0, 0], sizes = [1, 128], strides = [1, 1]} : vector<10x128xf32> to vector<1x128xf32>
    %c0_1 = arith.constant 0 : index
    %c0_2 = arith.constant 0 : index
    %2 = memref.load %arg2[%c0_1, %c0_2] : memref<3x10xf32, #tpu.memory_space<smem>>
    %3 = vector.broadcast %2 : f32 to vector<1x128xf32>
    %4 = arith.mulf %1, %3 : vector<1x128xf32>
    %5 = vector.extract_strided_slice %0 {offsets = [1, 0], sizes = [1, 128], strides = [1, 1]} : vector<10x128xf32> to vector<1x128xf32>
    %c0_3 = arith.constant 0 : index
    %c1 = arith.constant 1 : index
    %6 = memref.load %arg2[%c0_3, %c1] : memref<3x10xf32, #tpu.memory_space<smem>>
    %7 = vector.broadcast %6 : f32 to vector<1x128xf32>
    %8 = arith.mulf %5, %7 : vector<1x128xf32>
    %9 = arith.addf %4, %8 : vector<1x128xf32>
    %10 = vector.extract_strided_slice %0 {offsets = [2, 0], sizes = [1, 128], strides = [1, 1]} : vector<10x128xf32> to vector<1x128xf32>
    %c0_4 = arith.constant 0 : index
    %c2 = arith.constant 2 : index
    %11 = memref.load %arg2[%c0_4, %c2] : memref<3x10xf32, #tpu.memory_space<smem>>
    %12 = vector.broadcast %11 : f32 to vector<1x128xf32>
    %13 = arith.mulf %10, %12 : vector<1x128xf32>
    %14 = arith.addf %9, %13 : vector<1x128xf32>
    %15 = vector.extract_strided_slice %0 {offsets = [3, 0], sizes = [1, 128], strides = [1, 1]} : vector<10x128xf32> to vector<1x128xf32>
    %c0_5 = arith.constant 0 : index
    %c3 = arith.constant 3 : index
    %16 = memref.load %arg2[%c0_5, %c3] : memref<3x10xf32, #tpu.memory_space<smem>>
    %17 = vector.broadcast %16 : f32 to vector<1x128xf32>
    %18 = arith.mulf %15, %17 : vector<1x128xf32>
    %19 = arith.addf %14, %18 : vector<1x128xf32>
    %20 = vector.extract_strided_slice %0 {offsets = [4, 0], sizes = [1, 128], strides = [1, 1]} : vector<10x128xf32> to vector<1x128xf32>
    %c0_6 = arith.constant 0 : index
    %c4 = arith.constant 4 : index
    %21 = memref.load %arg2[%c0_6, %c4] : memref<3x10xf32, #tpu.memory_space<smem>>
    %22 = vector.broadcast %21 : f32 to vector<1x128xf32>
    %23 = arith.mulf %20, %22 : vector<1x128xf32>
    %24 = arith.addf %19, %23 : vector<1x128xf32>
    %25 = vector.extract_strided_slice %0 {offsets = [5, 0], sizes = [1, 128], strides = [1, 1]} : vector<10x128xf32> to vector<1x128xf32>
    %c0_7 = arith.constant 0 : index
    %c5 = arith.constant 5 : index
    %26 = memref.load %arg2[%c0_7, %c5] : memref<3x10xf32, #tpu.memory_space<smem>>
    %27 = vector.broadcast %26 : f32 to vector<1x128xf32>
    %28 = arith.mulf %25, %27 : vector<1x128xf32>
    %29 = arith.addf %24, %28 : vector<1x128xf32>
    %30 = vector.extract_strided_slice %0 {offsets = [6, 0], sizes = [1, 128], strides = [1, 1]} : vector<10x128xf32> to vector<1x128xf32>
    %c0_8 = arith.constant 0 : index
    %c6 = arith.constant 6 : index
    %31 = memref.load %arg2[%c0_8, %c6] : memref<3x10xf32, #tpu.memory_space<smem>>
    %32 = vector.broadcast %31 : f32 to vector<1x128xf32>
    %33 = arith.mulf %30, %32 : vector<1x128xf32>
    %34 = arith.addf %29, %33 : vector<1x128xf32>
    %35 = vector.extract_strided_slice %0 {offsets = [7, 0], sizes = [1, 128], strides = [1, 1]} : vector<10x128xf32> to vector<1x128xf32>
    %c0_9 = arith.constant 0 : index
    %c7 = arith.constant 7 : index
    %36 = memref.load %arg2[%c0_9, %c7] : memref<3x10xf32, #tpu.memory_space<smem>>
    %37 = vector.broadcast %36 : f32 to vector<1x128xf32>
    %38 = arith.mulf %35, %37 : vector<1x128xf32>
    %39 = arith.addf %34, %38 : vector<1x128xf32>
    %40 = vector.extract_strided_slice %0 {offsets = [8, 0], sizes = [1, 128], strides = [1, 1]} : vector<10x128xf32> to vector<1x128xf32>
    %c0_10 = arith.constant 0 : index
    %c8 = arith.constant 8 : index
    %41 = memref.load %arg2[%c0_10, %c8] : memref<3x10xf32, #tpu.memory_space<smem>>
    %42 = vector.broadcast %41 : f32 to vector<1x128xf32>
    %43 = arith.mulf %40, %42 : vector<1x128xf32>
    %44 = arith.addf %39, %43 : vector<1x128xf32>
    %45 = vector.extract_strided_slice %0 {offsets = [9, 0], sizes = [1, 128], strides = [1, 1]} : vector<10x128xf32> to vector<1x128xf32>
    %c0_11 = arith.constant 0 : index
    %c9 = arith.constant 9 : index
    %46 = memref.load %arg2[%c0_11, %c9] : memref<3x10xf32, #tpu.memory_space<smem>>
    %47 = vector.broadcast %46 : f32 to vector<1x128xf32>
    %48 = arith.mulf %45, %47 : vector<1x128xf32>
    %49 = arith.addf %44, %48 : vector<1x128xf32>
    %c0_12 = arith.constant 0 : index
    %c0_13 = arith.constant 0 : index
    %50 = memref.load %arg3[%c0_12, %c0_13] : memref<1x3xf32, #tpu.memory_space<smem>>
    %51 = vector.broadcast %50 : f32 to vector<1x128xf32>
    %52 = arith.addf %49, %51 : vector<1x128xf32>
    %53 = vector.extract_strided_slice %0 {offsets = [0, 0], sizes = [1, 128], strides = [1, 1]} : vector<10x128xf32> to vector<1x128xf32>
    %c1_14 = arith.constant 1 : index
    %c0_15 = arith.constant 0 : index
    %54 = memref.load %arg2[%c1_14, %c0_15] : memref<3x10xf32, #tpu.memory_space<smem>>
    %55 = vector.broadcast %54 : f32 to vector<1x128xf32>
    %56 = arith.mulf %53, %55 : vector<1x128xf32>
    %57 = vector.extract_strided_slice %0 {offsets = [1, 0], sizes = [1, 128], strides = [1, 1]} : vector<10x128xf32> to vector<1x128xf32>
    %c1_16 = arith.constant 1 : index
    %c1_17 = arith.constant 1 : index
    %58 = memref.load %arg2[%c1_16, %c1_17] : memref<3x10xf32, #tpu.memory_space<smem>>
    %59 = vector.broadcast %58 : f32 to vector<1x128xf32>
    %60 = arith.mulf %57, %59 : vector<1x128xf32>
    %61 = arith.addf %56, %60 : vector<1x128xf32>
    %62 = vector.extract_strided_slice %0 {offsets = [2, 0], sizes = [1, 128], strides = [1, 1]} : vector<10x128xf32> to vector<1x128xf32>
    %c1_18 = arith.constant 1 : index
    %c2_19 = arith.constant 2 : index
    %63 = memref.load %arg2[%c1_18, %c2_19] : memref<3x10xf32, #tpu.memory_space<smem>>
    %64 = vector.broadcast %63 : f32 to vector<1x128xf32>
    %65 = arith.mulf %62, %64 : vector<1x128xf32>
    %66 = arith.addf %61, %65 : vector<1x128xf32>
    %67 = vector.extract_strided_slice %0 {offsets = [3, 0], sizes = [1, 128], strides = [1, 1]} : vector<10x128xf32> to vector<1x128xf32>
    %c1_20 = arith.constant 1 : index
    %c3_21 = arith.constant 3 : index
    %68 = memref.load %arg2[%c1_20, %c3_21] : memref<3x10xf32, #tpu.memory_space<smem>>
    %69 = vector.broadcast %68 : f32 to vector<1x128xf32>
    %70 = arith.mulf %67, %69 : vector<1x128xf32>
    %71 = arith.addf %66, %70 : vector<1x128xf32>
    %72 = vector.extract_strided_slice %0 {offsets = [4, 0], sizes = [1, 128], strides = [1, 1]} : vector<10x128xf32> to vector<1x128xf32>
    %c1_22 = arith.constant 1 : index
    %c4_23 = arith.constant 4 : index
    %73 = memref.load %arg2[%c1_22, %c4_23] : memref<3x10xf32, #tpu.memory_space<smem>>
    %74 = vector.broadcast %73 : f32 to vector<1x128xf32>
    %75 = arith.mulf %72, %74 : vector<1x128xf32>
    %76 = arith.addf %71, %75 : vector<1x128xf32>
    %77 = vector.extract_strided_slice %0 {offsets = [5, 0], sizes = [1, 128], strides = [1, 1]} : vector<10x128xf32> to vector<1x128xf32>
    %c1_24 = arith.constant 1 : index
    %c5_25 = arith.constant 5 : index
    %78 = memref.load %arg2[%c1_24, %c5_25] : memref<3x10xf32, #tpu.memory_space<smem>>
    %79 = vector.broadcast %78 : f32 to vector<1x128xf32>
    %80 = arith.mulf %77, %79 : vector<1x128xf32>
    %81 = arith.addf %76, %80 : vector<1x128xf32>
    %82 = vector.extract_strided_slice %0 {offsets = [6, 0], sizes = [1, 128], strides = [1, 1]} : vector<10x128xf32> to vector<1x128xf32>
    %c1_26 = arith.constant 1 : index
    %c6_27 = arith.constant 6 : index
    %83 = memref.load %arg2[%c1_26, %c6_27] : memref<3x10xf32, #tpu.memory_space<smem>>
    %84 = vector.broadcast %83 : f32 to vector<1x128xf32>
    %85 = arith.mulf %82, %84 : vector<1x128xf32>
    %86 = arith.addf %81, %85 : vector<1x128xf32>
    %87 = vector.extract_strided_slice %0 {offsets = [7, 0], sizes = [1, 128], strides = [1, 1]} : vector<10x128xf32> to vector<1x128xf32>
    %c1_28 = arith.constant 1 : index
    %c7_29 = arith.constant 7 : index
    %88 = memref.load %arg2[%c1_28, %c7_29] : memref<3x10xf32, #tpu.memory_space<smem>>
    %89 = vector.broadcast %88 : f32 to vector<1x128xf32>
    %90 = arith.mulf %87, %89 : vector<1x128xf32>
    %91 = arith.addf %86, %90 : vector<1x128xf32>
    %92 = vector.extract_strided_slice %0 {offsets = [8, 0], sizes = [1, 128], strides = [1, 1]} : vector<10x128xf32> to vector<1x128xf32>
    %c1_30 = arith.constant 1 : index
    %c8_31 = arith.constant 8 : index
    %93 = memref.load %arg2[%c1_30, %c8_31] : memref<3x10xf32, #tpu.memory_space<smem>>
    %94 = vector.broadcast %93 : f32 to vector<1x128xf32>
    %95 = arith.mulf %92, %94 : vector<1x128xf32>
    %96 = arith.addf %91, %95 : vector<1x128xf32>
    %97 = vector.extract_strided_slice %0 {offsets = [9, 0], sizes = [1, 128], strides = [1, 1]} : vector<10x128xf32> to vector<1x128xf32>
    %c1_32 = arith.constant 1 : index
    %c9_33 = arith.constant 9 : index
    %98 = memref.load %arg2[%c1_32, %c9_33] : memref<3x10xf32, #tpu.memory_space<smem>>
    %99 = vector.broadcast %98 : f32 to vector<1x128xf32>
    %100 = arith.mulf %97, %99 : vector<1x128xf32>
    %101 = arith.addf %96, %100 : vector<1x128xf32>
    %c0_34 = arith.constant 0 : index
    %c1_35 = arith.constant 1 : index
    %102 = memref.load %arg3[%c0_34, %c1_35] : memref<1x3xf32, #tpu.memory_space<smem>>
    %103 = vector.broadcast %102 : f32 to vector<1x128xf32>
    %104 = arith.addf %101, %103 : vector<1x128xf32>
    %105 = vector.extract_strided_slice %0 {offsets = [0, 0], sizes = [1, 128], strides = [1, 1]} : vector<10x128xf32> to vector<1x128xf32>
    %c2_36 = arith.constant 2 : index
    %c0_37 = arith.constant 0 : index
    %106 = memref.load %arg2[%c2_36, %c0_37] : memref<3x10xf32, #tpu.memory_space<smem>>
    %107 = vector.broadcast %106 : f32 to vector<1x128xf32>
    %108 = arith.mulf %105, %107 : vector<1x128xf32>
    %109 = vector.extract_strided_slice %0 {offsets = [1, 0], sizes = [1, 128], strides = [1, 1]} : vector<10x128xf32> to vector<1x128xf32>
    %c2_38 = arith.constant 2 : index
    %c1_39 = arith.constant 1 : index
    %110 = memref.load %arg2[%c2_38, %c1_39] : memref<3x10xf32, #tpu.memory_space<smem>>
    %111 = vector.broadcast %110 : f32 to vector<1x128xf32>
    %112 = arith.mulf %109, %111 : vector<1x128xf32>
    %113 = arith.addf %108, %112 : vector<1x128xf32>
    %114 = vector.extract_strided_slice %0 {offsets = [2, 0], sizes = [1, 128], strides = [1, 1]} : vector<10x128xf32> to vector<1x128xf32>
    %c2_40 = arith.constant 2 : index
    %c2_41 = arith.constant 2 : index
    %115 = memref.load %arg2[%c2_40, %c2_41] : memref<3x10xf32, #tpu.memory_space<smem>>
    %116 = vector.broadcast %115 : f32 to vector<1x128xf32>
    %117 = arith.mulf %114, %116 : vector<1x128xf32>
    %118 = arith.addf %113, %117 : vector<1x128xf32>
    %119 = vector.extract_strided_slice %0 {offsets = [3, 0], sizes = [1, 128], strides = [1, 1]} : vector<10x128xf32> to vector<1x128xf32>
    %c2_42 = arith.constant 2 : index
    %c3_43 = arith.constant 3 : index
    %120 = memref.load %arg2[%c2_42, %c3_43] : memref<3x10xf32, #tpu.memory_space<smem>>
    %121 = vector.broadcast %120 : f32 to vector<1x128xf32>
    %122 = arith.mulf %119, %121 : vector<1x128xf32>
    %123 = arith.addf %118, %122 : vector<1x128xf32>
    %124 = vector.extract_strided_slice %0 {offsets = [4, 0], sizes = [1, 128], strides = [1, 1]} : vector<10x128xf32> to vector<1x128xf32>
    %c2_44 = arith.constant 2 : index
    %c4_45 = arith.constant 4 : index
    %125 = memref.load %arg2[%c2_44, %c4_45] : memref<3x10xf32, #tpu.memory_space<smem>>
    %126 = vector.broadcast %125 : f32 to vector<1x128xf32>
    %127 = arith.mulf %124, %126 : vector<1x128xf32>
    %128 = arith.addf %123, %127 : vector<1x128xf32>
    %129 = vector.extract_strided_slice %0 {offsets = [5, 0], sizes = [1, 128], strides = [1, 1]} : vector<10x128xf32> to vector<1x128xf32>
    %c2_46 = arith.constant 2 : index
    %c5_47 = arith.constant 5 : index
    %130 = memref.load %arg2[%c2_46, %c5_47] : memref<3x10xf32, #tpu.memory_space<smem>>
    %131 = vector.broadcast %130 : f32 to vector<1x128xf32>
    %132 = arith.mulf %129, %131 : vector<1x128xf32>
    %133 = arith.addf %128, %132 : vector<1x128xf32>
    %134 = vector.extract_strided_slice %0 {offsets = [6, 0], sizes = [1, 128], strides = [1, 1]} : vector<10x128xf32> to vector<1x128xf32>
    %c2_48 = arith.constant 2 : index
    %c6_49 = arith.constant 6 : index
    %135 = memref.load %arg2[%c2_48, %c6_49] : memref<3x10xf32, #tpu.memory_space<smem>>
    %136 = vector.broadcast %135 : f32 to vector<1x128xf32>
    %137 = arith.mulf %134, %136 : vector<1x128xf32>
    %138 = arith.addf %133, %137 : vector<1x128xf32>
    %139 = vector.extract_strided_slice %0 {offsets = [7, 0], sizes = [1, 128], strides = [1, 1]} : vector<10x128xf32> to vector<1x128xf32>
    %c2_50 = arith.constant 2 : index
    %c7_51 = arith.constant 7 : index
    %140 = memref.load %arg2[%c2_50, %c7_51] : memref<3x10xf32, #tpu.memory_space<smem>>
    %141 = vector.broadcast %140 : f32 to vector<1x128xf32>
    %142 = arith.mulf %139, %141 : vector<1x128xf32>
    %143 = arith.addf %138, %142 : vector<1x128xf32>
    %144 = vector.extract_strided_slice %0 {offsets = [8, 0], sizes = [1, 128], strides = [1, 1]} : vector<10x128xf32> to vector<1x128xf32>
    %c2_52 = arith.constant 2 : index
    %c8_53 = arith.constant 8 : index
    %145 = memref.load %arg2[%c2_52, %c8_53] : memref<3x10xf32, #tpu.memory_space<smem>>
    %146 = vector.broadcast %145 : f32 to vector<1x128xf32>
    %147 = arith.mulf %144, %146 : vector<1x128xf32>
    %148 = arith.addf %143, %147 : vector<1x128xf32>
    %149 = vector.extract_strided_slice %0 {offsets = [9, 0], sizes = [1, 128], strides = [1, 1]} : vector<10x128xf32> to vector<1x128xf32>
    %c2_54 = arith.constant 2 : index
    %c9_55 = arith.constant 9 : index
    %150 = memref.load %arg2[%c2_54, %c9_55] : memref<3x10xf32, #tpu.memory_space<smem>>
    %151 = vector.broadcast %150 : f32 to vector<1x128xf32>
    %152 = arith.mulf %149, %151 : vector<1x128xf32>
    %153 = arith.addf %148, %152 : vector<1x128xf32>
    %c0_56 = arith.constant 0 : index
    %c2_57 = arith.constant 2 : index
    %154 = memref.load %arg3[%c0_56, %c2_57] : memref<1x3xf32, #tpu.memory_space<smem>>
    %155 = vector.broadcast %154 : f32 to vector<1x128xf32>
    %156 = arith.addf %153, %155 : vector<1x128xf32>
    %157 = arith.maximumf %52, %104 : vector<1x128xf32>
    %158 = arith.maximumf %157, %156 : vector<1x128xf32>
    %159 = arith.subf %52, %158 : vector<1x128xf32>
    %160 = math.exp %159 : vector<1x128xf32>
    %161 = arith.subf %104, %158 : vector<1x128xf32>
    %162 = math.exp %161 : vector<1x128xf32>
    %163 = arith.subf %156, %158 : vector<1x128xf32>
    %164 = math.exp %163 : vector<1x128xf32>
    %165 = arith.addf %160, %162 : vector<1x128xf32>
    %166 = arith.addf %165, %164 : vector<1x128xf32>
    %167 = tpu.reciprocal %166 : vector<1x128xf32> -> vector<1x128xf32>
    %168 = arith.mulf %160, %167 : vector<1x128xf32>
    %c0_58 = arith.constant 0 : index
    %c0_59 = arith.constant 0 : index
    %169 = vector.load %arg4[%c0_58, %c0_59] : memref<3x128xf32, #tpu.memory_space<vmem>>, vector<1x128xf32>
    tpu.vector_store %arg4[%c0_58, %c0_59], %168 {strides = array<i32>} : memref<3x128xf32, #tpu.memory_space<vmem>>, vector<1x128xf32>,
    %170 = arith.mulf %162, %167 : vector<1x128xf32>
    %c1_60 = arith.constant 1 : index
    %c0_61 = arith.constant 0 : index
    %171 = vector.load %arg4[%c1_60, %c0_61] : memref<3x128xf32, #tpu.memory_space<vmem>>, vector<1x128xf32>
    tpu.vector_store %arg4[%c1_60, %c0_61], %170 {strides = array<i32>} : memref<3x128xf32, #tpu.memory_space<vmem>>, vector<1x128xf32>,
    %172 = arith.mulf %164, %167 : vector<1x128xf32>
    %c2_62 = arith.constant 2 : index
    %c0_63 = arith.constant 0 : index
    %173 = vector.load %arg4[%c2_62, %c0_63] : memref<3x128xf32, #tpu.memory_space<vmem>>, vector<1x128xf32>
    tpu.vector_store %arg4[%c2_62, %c0_63], %172 {strides = array<i32>} : memref<3x128xf32, #tpu.memory_space<vmem>>, vector<1x128xf32>,
    return
  }
  func.func @transform_0(%arg0: i32) -> (i32, i32) {
    %c0_i32 = arith.constant 0 : i32
    %c0_i32_0 = arith.constant 0 : i32
    return %c0_i32, %arg0 : i32, i32
  }
  func.func @transform_1(%arg0: i32) -> (i32, i32) {
    %c0_i32 = arith.constant 0 : i32
    %c0_i32_0 = arith.constant 0 : i32
    %c0_i32_1 = arith.constant 0 : i32
    return %c0_i32, %c0_i32_0 : i32, i32
  }
  func.func @transform_2(%arg0: i32) -> (i32, i32) {
    %c0_i32 = arith.constant 0 : i32
    %c0_i32_0 = arith.constant 0 : i32
    %c0_i32_1 = arith.constant 0 : i32
    return %c0_i32, %c0_i32_0 : i32, i32
  }
  func.func @transform_3(%arg0: i32) -> (i32, i32) {
    %c0_i32 = arith.constant 0 : i32
    %c0_i32_0 = arith.constant 0 : i32
    return %c0_i32, %arg0 : i32, i32
  }
}

</mosaic_0001>

<bundles_post_ra>
// kernel: tpu_custom_call.1
= control target key start
LH: loop header
LB: loop body
LE: loop exit
PB: predicated region body
PF: predicated region fallthrough
CT: control target
= control target key end

     0   :  { %s1079_s0 = inlined_call_operand.hbm [shape: f32[10,256], index: 0, kind: input, shape index: {}]   ;;  %s1080_s1 = inlined_call_operand.hbm [shape: f32[3,10], index: 1, kind: input, shape index: {}]   ;;  %s1081_s2 = inlined_call_operand.vmem [shape: f32[1,3], index: 2, kind: input, shape index: {}]   ;;  %s1082_s3 = inlined_call_operand.hbm [shape: f32[3,256], index: 3, kind: output, shape index: {}]  }
   0x1   :  { %1083 = sst [smem:[#allocation14_spill]] %s1080_s1 }
   0x2   :  { %8 = vsyncpa [#allocation3], 0 }
   0x3   :  { %10 = vsyncpa [#allocation3 + $0x1], 0 }
   0x4   :  { %11 = vsyncpa [#allocation5], 0 }
   0x5   :  { %12 = vsyncpa [#allocation6], 0 }
   0x6   :  { %13 = vsyncpa [#allocation4], 0 }
   0x7   :  { %15 = vsyncpa [#allocation4 + $0x1], 0  ;;  %s846_s12 = smov 0   ;;  %s848_s13 = smov 0  }
   0x8   :  { %s850_s14 = smov 0   ;;  %s852_s15 = smov 0  }
   0x9 LB: > { %s867_s16 = sadd.s32 4294967295, %s819_s15   ;;  %s560_s17 = sadd.s32 4294967294, %s819_s15   ;;  %s819_s15 = sphi %s852_s15, %s1095_s15   ;;  %s815_s14 = sphi %s850_s14, %s1094_s14   ;;  %s811_s13 = sphi %s848_s13, %s1093_s13   ;;  %s807_s12 = sphi %s846_s12, %s1092_s12  }
   0xa   : > { %s871_s18 = sadd.s32 1, %s819_s15   ;;  %s28_s19 = sadd.s32 1, %s815_s14 }
   0xb   : > { %s25_s20 = ssub.s32 %s819_s15, %s871_s18  ;;  %p35_p0 = scmp.ne.s32.totalorder %s815_s14, %s811_s13 }
   0xc   : > { %p26_p1 = scmp.eq.s32.totalorder %s25_s20, 0  ;;  %p36_p2 = scmp.eq.s32.totalorder %s819_s15, 0 }
   0xd   : > { %p41_p3 = scmp.ne.s32.totalorder %s811_s13, %s807_s12  ;;  %p42_p4 = scmp.eq.s32.totalorder %s867_s16, 0 }
   0xe   : > { %s883_s21 = scalar_select %p26_p1, %s815_s14, %s28_s19  }
   0xf   : > { %p885_p5 = por %p36_p2, %p35_p0  ;;  %p891_p6 = por %p42_p4, %p41_p3 }
  0x10   : > { %p107_p7 = scmp.eq.s32.totalorder %s867_s16, 1  ;;  %p113_p8 = scmp.eq.s32.totalorder %s560_s17, 1 }
  0x11   : > { %p561_p9 = scmp.ge.s32.totalorder %s819_s15, 1  ;;  %p120_p10 = scmp.lt.s32.totalorder %s819_s15, 3 }
  0x12   : > { %p898_p11 = por %p107_p7, %p35_p0  ;;  %p902_p12 = por %p113_p8, %p41_p3 }
  0x13   : > { %p906_p13 = pnand %p561_p9, %p120_p10  ;;  %s1089_s1 = sld [smem:[#allocation14_spill]] }
  0x14   : > { %p636_p2 = scmp.lt.s32.totalorder %s819_s15, 2  ;;  %s142_s5 = sshll.u32 %s1081_s2, 4  ;;  %s143_s5 = int_to_ptr.vmem [resolvable:$true] %s142_s5 }
  0x15   : > { %p619_p1 = pneg %p906_p13  ;;  %s821_s7 = smov [#allocation7]  }
  0x16   : > { %p924_p7 = pnand %p636_p2, %p885_p5  ;;  %s153_s8 = sand.u32 1, %s815_s14  }
  0x17   : > { %p620_p3 = pnand %p619_p1, %p42_p4  ;;  %s822_s9 = smov [#allocation8]  }
  0x18   : > { %s565_s10 = sshll.u32 %s153_s8, 4  ;;  %s566_s11 = sshll.u32 %s819_s15, 3 }
  0x19   : > { %s132_s29 = sshll.u32 %s1089_s1, 4  ;;  %s161_s20 = scalar_lea.hbm %s1079_s0, %s566_s11  ;;  %s133_s29 = int_to_ptr.hbm [resolvable:$true] %s132_s29 }
  0x1a   : > { %622 = dma.hbm_to_smem (!%p620_p3), %s133_s29, 64, %s821_s7, [#allocation5]  }
  0x1b   : > { %625 = dma.vmem_to_smem (!%p620_p3), %s143_s5, 16, %s822_s9, [#allocation6]  }
  0x1c   : > { %s157_s27 = scalar_lea.vmem [#allocation2], %s565_s10  ;;  %s162_s22 = sshll.u32 %s161_s20, 4  ;;  %s163_s22 = int_to_ptr.hbm [resolvable:$true] %s162_s22 }
  0x1d   : > { %s164_s28 = sshll.u32 %s157_s27, 4  ;;  %s154_s30 = scalar_lea.sflag [#allocation3], %s153_s8  ;;  %s165_s28 = int_to_ptr.vmem [resolvable:$true] %s164_s28 }
  0x1e   : > { %s715_s4 = sshra.s32 %s163_s22, 4  ;;  %p719_p8 = pneg %p924_p7  ;;  %s716_s4 = int_to_ptr.hbm [resolvable:$true] %s715_s4 }
  0x1f   : > { %s717_s1 = scalar_lea.hbm %s716_s4, 16  ;;  %s722_s7 = scalar_lea.hbm %s1079_s0, 32 }
  0x20   : > { %p718_p5 = scmp.ne.s32.totalorder %s716_s4, %s717_s1  ;;  %p723_p1 = scmp.lt.s32.totalorder %s716_s4, %s1079_s0 }
  0x21   : > { %p724_p2 = scmp.lt.s32.totalorder %s722_s7, %s717_s1 }
  0x22   : > { %p720_p9 = pnand %p719_p8, %p718_p5 }
  0x23   : > { %p725_p3 = por %p724_p2, %p723_p1 }
  0x24   : > { %p721_p10 = pneg %p720_p9 }
  0x26   : > { %p726_p0 = pnand %p725_p3, %p721_p10 }
  0x28   : > { %729 = shalt.err (!%p726_p0)
}
  0x29   : > { %s823_s8 = smov 256   ;;  %s824_s10 = smov 128  }
  0x2a   : > { %s825_s17 = smov 8   ;;  %176 = sbr.rel (%p906_p13) target bundleno = 148 (0x94), region = 32 }
  0x2b   : > { %629 = dma.hbm_to_vmem [thread:$0]  (!%p924_p7), %s163_s22, 256, %s165_s28, %s154_s30, %s823_s8, %s824_s10, %s825_s17  }
  0x2c   : > { %s946_s19 = sand.u32 (!%p906_p13), 1, %s811_s13  }
  0x2d   : > { %s568_s20 = sshll.u32 (!%p906_p13), %s946_s19, 4  ;;  %s179_s1 = scalar_lea.sflag (!%p906_p13), [#allocation3], %s946_s19 }
  0x2e   : > { %s950_s27 = scalar_lea.vmem (!%p906_p13), [#allocation2], %s568_s20 }
  0x2f   : > { %790 = dma.done.wait (%p891_p6), %s179_s1, 256  }
  0x30   : > { %792 = vsyncadd (%p891_p6), %s179_s1, 4294967040 }
  0x31   : > { %794 = dma.done.wait (%p42_p4), [#allocation5], 64  }
  0x32   : > { %796 = vsyncadd (%p42_p4), [#allocation5], 4294967232 }
  0x33   : > { %798 = dma.done.wait (%p42_p4), [#allocation6], 16  }
  0x34   : > { %800 = vsyncadd (%p42_p4), [#allocation6], 4294967280 }
  0x35   : > { %198 = sfence }
  0x36   : > { %s219_s26 = sld [smem:[#allocation7]]  ;;  %v965_v0 = vld [vmem:[%s950_s27] sm:$0xff]  ;;  %v1002_v49 = vld [vmem:[%s950_s27 + $0x8] sm:$0x3] }
  0x37   : > { %s572_s6 = sld [smem:[#allocation7 + $0x1]] }
  0x38   : > { %s573_s28 = sld [smem:[#allocation7 + $0x2]] }
  0x39   : > { %s574_s22 = sld [smem:[#allocation7 + $0x3]] }
  0x3a   : > { %s575_s23 = sld [smem:[#allocation7 + $0x4]] }
  0x3b   : > { %s576_s30 = sld [smem:[#allocation7 + $0x5]] }
  0x3c   : > { %v220_v1 = vstv %s219_s26  ;;  %s577_s4 = sld [smem:[#allocation7 + $0x6]] }
  0x3d   : > { %v223_v2 = vstv %s572_s6  ;;  %v221_v3 = vmul.f32 %v220_v1, %v965_v0  ;;  %s969_s29 = sld [smem:[#allocation7 + $0x7]] }
  0x3e   : > { %v224_v4 = vmul.f32 %v223_v2, %v965_v0  ;;  %v230_v5 = vstv %s573_s28  ;;  %s972_s5 = sld [smem:[#allocation7 + $0x8]] }
  0x3f   : > { %v231_v6 = vmul.f32 %v230_v5, %v965_v0  ;;  %v237_v7 = vstv %s574_s22  ;;  %s975_s7 = sld [smem:[#allocation7 + $0x9]] }
  0x40   : > { %v226_v8 = vrot.slane %v224_v4, 1  ;;  %v238_v9 = vmul.f32 %v237_v7, %v965_v0  ;;  %v244_v10 = vstv %s575_s23  ;;  %s581_s9 = sld [smem:[#allocation7 + $0x80]] }
  0x41   : > { %v233_v11 = vrot.slane %v231_v6, 2  ;;  %v245_v12 = vmul.f32 %v244_v10, %v965_v0  ;;  %v251_v13 = vstv %s576_s30  ;;  %s582_s11 = sld [smem:[#allocation7 + $0x81]] }
  0x42   : > { %v228_v14 = vadd.f32 %v226_v8, %v221_v3  ;;  %v240_v15 = vrot.slane %v238_v9, 3  ;;  %v252_v16 = vmul.f32 %v251_v13, %v965_v0  ;;  %v258_v17 = vstv %s577_s4  ;;  %s583_s8 = sld [smem:[#allocation7 + $0x82]] }
  0x43   : > { %v247_v19 = vrot.slane %v245_v12, 4  ;;  %s584_s10 = sld [smem:[#allocation7 + $0x83]]  ;;  %v259_v22 = vmul.f32 %v258_v17, %v965_v0  ;;  %v265_v23 = vstv %s969_s29 }
  0x44   : > { %v235_v18 = vadd.f32 %v233_v11, %v228_v14  ;;  %s585_s17 = sld [smem:[#allocation7 + $0x84]]  ;;  %v254_v21 = vrot.slane %v252_v16, 5  ;;  %v266_v27 = vmul.f32 %v265_v23, %v965_v0  ;;  %v272_v47 = vstv %s972_s5 }
  0x45   : > { %s586_s20 = sld [smem:[#allocation7 + $0x85]]  ;;  %v261_v32 = vrot.slane %v259_v22, 6  ;;  %v276_v50 = vstv %s975_s7  ;;  %v273_v59 = vmul.f32 %v272_v47, %v1002_v49 }
  0x46   : > { %v242_v20 = vadd.f32 %v240_v15, %v235_v18  ;;  %v286_v24 = vstv %s581_s9  ;;  %s981_s1 = sld [smem:[#allocation7 + $0x86]]  ;;  %v268_v46 = vrot.slane %v266_v27, 7  ;;  %v277_v60 = vmul.f32 %v276_v50, %v1002_v49 }
  0x47   : > { %v289_v26 = vstv %s582_s11  ;;  %s983_s26 = sld [smem:[#allocation7 + $0x87]]  ;;  %v287_v28 = vmul.f32 %v286_v24, %v965_v0 }
  0x48   : > { %v249_v25 = vadd.f32 %v247_v19, %v242_v20  ;;  %v290_v29 = vmul.f32 %v289_v26, %v965_v0  ;;  %v296_v30 = vstv %s583_s8  ;;  %s988_s6 = sld [smem:[#allocation7 + $0x88]] }
  0x49   : > { %v297_v33 = vmul.f32 %v296_v30, %v965_v0  ;;  %v303_v34 = vstv %s584_s10  ;;  %s992_s28 = sld [smem:[#allocation7 + $0x89]] }
  0x4a   : > { %v256_v31 = vadd.f32 %v254_v21, %v249_v25  ;;  %v292_v35 = vrot.slane %v290_v29, 1  ;;  %v304_v36 = vmul.f32 %v303_v34, %v965_v0  ;;  %v310_v37 = vstv %s585_s17  ;;  %s995_s22 = sld [smem:[#allocation7 + $0x100]] }
  0x4b   : > { %v299_v38 = vrot.slane %v297_v33, 2  ;;  %v311_v39 = vmul.f32 %v310_v37, %v965_v0  ;;  %v317_v40 = vstv %s586_s20  ;;  %s593_s23 = sld [smem:[#allocation7 + $0x101]]  ;;  %v279_v29 = vrot.slane %v277_v60, 1  ;;  %s571_s20 = sshll.u32 %s946_s19, 2 }
  0x4c   : > { %v294_v41 = vadd.f32 %v292_v35, %v287_v28  ;;  %v306_v42 = vrot.slane %v304_v36, 3  ;;  %v318_v43 = vmul.f32 %v317_v40, %v965_v0  ;;  %v324_v44 = vstv %s981_s1  ;;  %s594_s30 = sld [smem:[#allocation7 + $0x102]]  ;;  %s604_s1 = sshll.u32 %s867_s16, 2 }
  0x4d   : > { %v263_v45 = vadd.f32 %v261_v32, %v256_v31  ;;  %v331_v48 = vstv %s983_s26  ;;  %v313_v52 = vrot.slane %v311_v39, 4  ;;  %v325_v53 = vmul.f32 %v324_v44, %v965_v0  ;;  %s595_s4 = sld [smem:[#allocation7 + $0x103]]  ;;  %s451_s16 = scalar_lea.sflag [#allocation4], %s946_s19 }
  0x4e   : > { %v301_v51 = vadd.f32 %v299_v38, %v294_v41  ;;  %s1006_s29 = sld [smem:[#allocation7 + $0x104]]  ;;  %v320_v55 = vrot.slane %v318_v43, 5  ;;  %v332_v56 = vmul.f32 %v331_v48, %v965_v0  ;;  %v338_v57 = vstv %s988_s6 }
  0x4f   : > { %s1010_s5 = sld [smem:[#allocation7 + $0x105]]  ;;  %v270_v58 = vadd.f32 %v268_v46, %v263_v45  ;;  %v327_v63 = vrot.slane %v325_v53, 6  ;;  %v342_v1 = vstv %s992_s28  ;;  %v339_v3 = vmul.f32 %v338_v57, %v1002_v49  ;;  %s461_s28 = scalar_lea.hbm %s1082_s3, %s604_s1 }
  0x50   : > { %v308_v54 = vadd.f32 %v306_v42, %v301_v51  ;;  %v352_v61 = vstv %s995_s22  ;;  %s1015_s27 = sld [smem:[#allocation7 + $0x106]]  ;;  %v334_v8 = vrot.slane %v332_v56, 7  ;;  %v343_v11 = vmul.f32 %v342_v1, %v1002_v49  ;;  %s216_s22 = scalar_lea.vmem [#allocation9], %s571_s20 }
  0x51   : > { %v355_v2 = vstv %s593_s23  ;;  %s1018_s7 = sld [smem:[#allocation7 + $0x107]]  ;;  %v353_v4 = vmul.f32 %v352_v61, %v965_v0  ;;  %v274_v28 = vadd.f32 %v273_v59, %v270_v58  ;;  %s463_s23 = sshll.u32 %s216_s22, 4  ;;  %s464_s23 = int_to_ptr.vmem [resolvable:$true] %s463_s23 }
  0x52   : > { %v315_v62 = vadd.f32 %v313_v52, %v308_v54  ;;  %v356_v5 = vmul.f32 %v355_v2, %v965_v0  ;;  %v362_v6 = vstv %s594_s30  ;;  %s1024_s9 = sld [smem:[#allocation7 + $0x109]]  ;;  %v345_v30 = vrot.slane %v343_v11, 1  ;;  %s465_s30 = sshll.u32 %s461_s28, 4  ;;  %s466_s30 = int_to_ptr.hbm [resolvable:$true] %s465_s30 }
  0x53   : > { %v363_v9 = vmul.f32 %v362_v6, %v965_v0  ;;  %v369_v10 = vstv %s595_s4  ;;  %s1031_s11 = sld [smem:[#allocation7 + $0x108]]  ;;  %v281_v38 = vadd.f32 %v279_v29, %v274_v28  ;;  %s759_s4 = sshra.s32 %s466_s30, 4  ;;  %s760_s4 = int_to_ptr.hbm [resolvable:$true] %s759_s4 }
  0x54   : > { %v322_v7 = vadd.f32 %v320_v55, %v315_v62  ;;  %v358_v12 = vrot.slane %v356_v5, 1  ;;  %v370_v13 = vmul.f32 %v369_v10, %v965_v0  ;;  %v376_v14 = vstv %s1006_s29  ;;  %s1033_s8 = sld [smem:[#allocation8]]  ;;  %s761_s29 = scalar_lea.hbm %s760_s4, 4 }
  0x55   : > { %v365_v16 = vrot.slane %v363_v9, 2  ;;  %v377_v17 = vmul.f32 %v376_v14, %v965_v0  ;;  %v383_v18 = vstv %s1010_s5  ;;  %s591_s10 = sld [smem:[#allocation8 + $0x1]]  ;;  %p762_p4 = scmp.ne.s32.totalorder %s760_s4, %s761_s29 }
  0x56   : > { %v329_v15 = vadd.f32 %v327_v63, %v322_v7  ;;  %v360_v19 = vadd.f32 %v358_v12, %v353_v4  ;;  %v372_v20 = vrot.slane %v370_v13, 3  ;;  %v384_v21 = vmul.f32 %v383_v18, %v965_v0  ;;  %s602_s17 = sld [smem:[#allocation8 + $0x2]]  ;;  %p766_p0 = scmp.lt.s32.totalorder %s760_s4, %s1082_s3 }
  0x57   : > { %v390_v22 = vstv %s1015_s27  ;;  %v397_v24 = vstv %s1018_s7  ;;  %v379_v26 = vrot.slane %v377_v17, 4  ;;  %p763_p6 = pnand %p762_p4, %p898_p11  ;;  %s765_s7 = scalar_lea.hbm %s1082_s3, 8 }
  0x58   : > { %v336_v23 = vadd.f32 %v334_v8, %v329_v15  ;;  %v367_v25 = vadd.f32 %v365_v16, %v360_v19  ;;  %v391_v27 = vmul.f32 %v390_v22, %v965_v0  ;;  %v386_v33 = vrot.slane %v384_v21, 5  ;;  %p767_p7 = scmp.lt.s32.totalorder %s765_s7, %s761_s29 }
  0x59   : > { %v398_v34 = vmul.f32 %v397_v24, %v965_v0  ;;  %v408_v35 = vstv %s1024_s9  ;;  %v404_v39 = vstv %s1031_s11  ;;  %p764_p13 = pneg %p763_p6 }
  0x5a   : > { %v340_v31 = vadd.f32 %v339_v3, %v336_v23  ;;  %v374_v32 = vadd.f32 %v372_v20, %v367_v25  ;;  %v393_v37 = vrot.slane %v391_v27, 6  ;;  %v409_v43 = vmul.f32 %v408_v35, %v1002_v49  ;;  %p768_p5 = por %p767_p7, %p766_p0 }
  0x5b   : > { %v400_v42 = vrot.slane %v398_v34, 7  ;;  %v283_v44 = vstv %s1033_s8  ;;  %v349_v45 = vstv %s591_s10  ;;  %v405_v47 = vmul.f32 %v404_v39, %v1002_v49 }
  0x5c   : > { %v381_v36 = vadd.f32 %v379_v26, %v374_v32  ;;  %v347_v40 = vadd.f32 %v345_v30, %v340_v31  ;;  %v284_v48 = vadd.f32 %v283_v44, %v281_v38  ;;  %v411_v0 = vrot.slane %v409_v43, 1  ;;  %p769_p8 = pnand %p768_p5, %p764_p13 }
  0x5d   : > { %v415_v53 = vstv %s602_s17 }
  0x5e   : > { %v388_v41 = vadd.f32 %v386_v33, %v381_v36  ;;  %v350_v50 = vadd.f32 %v349_v45, %v347_v40 }
  0x60   : > { %v395_v46 = vadd.f32 %v393_v37, %v388_v41  ;;  %v417_v55 = vmax.f32 %v284_v48, %v350_v50 }
  0x62   : > { %v402_v51 = vadd.f32 %v400_v42, %v395_v46 }
  0x64   : > { %v406_v52 = vadd.f32 %v405_v47, %v402_v51 }
  0x66   : > { %v413_v54 = vadd.f32 %v411_v0, %v406_v52 }
  0x68   : > { %v416_v56 = vadd.f32 %v415_v53, %v413_v54 }
  0x6a   : > { %v418_v57 = vmax.f32 %v417_v55, %v416_v56 }
  0x6c   : > { %v419_v58 = vsub.f32 %v284_v48, %v418_v57  ;;  %v422_v59 = vsub.f32 %v350_v50, %v418_v57  ;;  %v425_v60 = vsub.f32 %v416_v56, %v418_v57 }
  0x6e   : > { %v420_v61 = vmul.f32 1.442695, %v419_v58  ;;  %v423_v62 = vmul.f32 1.442695, %v422_v59  ;;  %v426_v63 = vmul.f32 1.442695, %v425_v60 }
  0x70   : > { %677 = vpow2.f32 %v420_v61 }
  0x71   : > { %679 = vpow2.f32 %v423_v62 }
  0x72   : > { %681 = vpow2.f32 %v426_v63 }
  0x76   : > { %v678_v49 = vpop.eup %677 }
  0x77   : > { %v680_v1 = vpop.eup %679 }
  0x78   : > { %v682_v2 = vpop.eup %681  ;;  %v428_v3 = vadd.f32 %v680_v1, %v678_v49 }
  0x7a   : > { %v429_v4 = vadd.f32 %v682_v2, %v428_v3 }
  0x7c   : > { %683 = vrcp.f32 %v429_v4  ;;  %v441_v7 = vand.u32 2147483648, %v429_v4  ;;  %vm435_vm0 = vweird.f32 %v429_v4  ;;  %v439_v9 = vand.u32 2147483647, %v429_v4 }
  0x7e   : > { %v442_v11 = vor.u32 1.1754944e-38, %v441_v7  ;;  %vm440_vm3 = vcmp.eq.f32.partialorder %v439_v9, 8.507059e+37 }
  0x82   : > { %v684_v5 = vpop.eup %683 }
  0x83   : > { %v431_v6 = vmul.f32 %v684_v5, %v429_v4  ;;  %vm436_vm1 = vweird.f32 %v684_v5 }
  0x84   : > { %vm437_vm2 = vmor %vm435_vm0, %vm436_vm1 }
  0x85   : > { %v432_v8 = vsub.f32 1.0, %v431_v6 }
  0x87   : > { %v433_v10 = vmul.f32 %v684_v5, %v432_v8 }
  0x89   : > { %v434_v12 = vadd.f32 %v684_v5, %v433_v10 }
  0x8b   : > { %v438_v13 = vsel %vm437_vm2, %v684_v5, %v434_v12 }
  0x8c   : > { %v443_v14 = vsel %vm440_vm3, %v442_v11, %v438_v13 }
  0x8d   : > { %v444_v15 = vmul.f32 %v678_v49, %v443_v14  ;;  %v446_v16 = vmul.f32 %v680_v1, %v443_v14  ;;  %v448_v17 = vmul.f32 %v682_v2, %v443_v14 }
  0x8f   : > { %445 = vst [vmem:[%s216_s22] sm:$0x1] %v444_v15 }
  0x90   : > { %447 = vst [vmem:[%s216_s22 + $0x1] sm:$0x1] %v446_v16 }
  0x91   : > { %449 = vst [vmem:[%s216_s22 + $0x2] sm:$0x1] %v448_v17 }
  0x92   : > { %772 = shalt.err (!%p769_p8)
}
  0x93   : > { %617 = dma.vmem_to_hbm [thread:$0]  (%p898_p11), %s464_s23, 64, %s466_s30, %s451_s16  }
  0x94 PF: > { %s477_s19 = sand.u32 1, %s807_s12   ;;  %p1091_p9 = scmp.ge.s32.totalorder %s819_s15, 2 }
  0x95   : > { %s478_s8 = scalar_lea.sflag [#allocation4], %s477_s19 }
  0x96   : > { %p631_p10 = pnand %p1091_p9, %p902_p12 }
  0x98   : > { %p632_p1 = pneg %p631_p10 }
  0x9a   : > { %802 = dma.done.wait (%p632_p1), %s478_s8, 64  }
  0x9b   : > { %804 = vsyncadd (%p632_p1), %s478_s8, 4294967232  ;;  %p18_p2 = scmp.ge.s32.totalorder %s871_s18, 4   ;;  %s1092_s12 = smov %s811_s13 }
  0x9c   : > { %s1093_s13 = smov %s815_s14  ;;  %s1094_s14 = smov %s883_s21 }
  0x9d   : > { %s1095_s15 = smov %s871_s18  ;;  %20 = sbr.rel (!%p18_p2) target bundleno = 9 (0x9), region = 87 }
  0xa2   :  { %484 = vsyncpa [#allocation3], 1 }
  0xa3   :  { %486 = vsyncpa [#allocation3 + $0x1], 1 }
  0xa4   :  { %487 = vsyncpa [#allocation4], 1 }
  0xa5   :  { %489 = vsyncpa [#allocation4 + $0x1], 1 }
  0xa6   :  { %490 = vsyncpa [#allocation5], 1 }
  0xa7   :  { %492 = vsyncpa [#allocation5 + $0x1], 1 }
  0xa8   :  { %493 = vsyncpa [#allocation6], 1 }
  0xa9   :  { %495 = vsyncpa [#allocation6 + $0x1], 1 }

</bundles_post_ra>
